<compile_context>
chip_gen: v7x
topology: tpu7x:2x2x1
jax: 0.10.0
libtpu: 0.0.40
codegen_flags: <defaults>
</compile_context>

<pallas_src>
import math
from functools import partial

import numpy as np

import jax
import jax.numpy as jnp
from jax.experimental import pallas as pl
from jax.experimental.pallas import tpu as pltpu


# ----------------------------------------------------------------------------
# Host-side (init-time) Clebsch-Gordan coefficient generation.
# Replaces the sympy-based `get_clebsch_gordan_coefficient` with the Racah
# formula (exact for small integer l).
# ----------------------------------------------------------------------------
def _cg_coefficient(j1, m1, j2, m2, j, m):
    if m1 + m2 != m:
        return 0.0
    if j < abs(j1 - j2) or j > j1 + j2:
        return 0.0
    if abs(m1) > j1 or abs(m2) > j2 or abs(m) > j:
        return 0.0
    f = math.factorial
    pref = math.sqrt(
        (2 * j + 1)
        * f(j + j1 - j2) * f(j - j1 + j2) * f(j1 + j2 - j)
        / f(j1 + j2 + j + 1)
    )
    pref *= math.sqrt(
        f(j + m) * f(j - m) * f(j1 - m1) * f(j1 + m1) * f(j2 - m2) * f(j2 + m2)
    )
    kmin = max(0, j2 - j - m1, j1 + m2 - j)
    kmax = min(j1 + j2 - j, j1 - m1, j2 + m2)
    s = 0.0
    for k in range(kmin, kmax + 1):
        s += (-1.0) ** k / (
            f(k) * f(j1 + j2 - j - k) * f(j1 - m1 - k) * f(j2 + m2 - k)
            * f(j - j2 + m1 + k) * f(j - j1 - m2 + k)
        )
    return pref * s


def csh_to_rsh(j):
    """Unitary complex->real spherical-harmonic change-of-basis matrix."""
    C = np.zeros((2 * j + 1, 2 * j + 1), dtype=np.complex128)
    isq2 = 1.0 / math.sqrt(2.0)
    for m in range(-j, j + 1):
        if m < 0:
            am = -m
            C[j - am, j + m] = 1j * isq2
            C[j + am, j + m] = -1j * ((-1) ** am) * isq2
        elif m == 0:
            C[j, j] = 1.0
        else:
            C[j - m, j + m] = isq2
            C[j + m, j + m] = ((-1) ** m) * isq2
    return C


def get_rsh_cg_coefficients(j1, j2, j):
    """Real-spherical-harmonic CG coefficients in compact (4, nnz) form."""
    csh_cg = np.zeros((2 * j1 + 1, 2 * j2 + 1, 2 * j + 1), dtype=np.complex128)
    for m1 in range(-j1, j1 + 1):
        for m2 in range(-j2, j2 + 1):
            m = m1 + m2
            if m < -j or m > j:
                continue
            csh_cg[j1 + m1, j2 + m2, j + m] = _cg_coefficient(j1, m1, j2, m2, j, m)
    c1, c2, c3 = csh_to_rsh(j1), csh_to_rsh(j2), csh_to_rsh(j)
    rsh_cg = np.einsum("abc,ai,bj,ck->ijk", csh_cg, c1, c2, c3.conj()) * ((-1j) ** (j1 + j2 + j))
    assert np.max(np.abs(rsh_cg.imag)) < 1e-8
    coeffs = rsh_cg.real
    # cg_compactify
    j1s, j2s, js = np.meshgrid(
        np.arange(-j1, j1 + 1), np.arange(-j2, j2 + 1), np.arange(-j, j + 1), indexing="ij"
    )
    mask = np.abs(coeffs) > 1e-12
    return np.stack(
        [j1s[mask].astype(np.float64), j2s[mask].astype(np.float64),
         js[mask].astype(np.float64), coeffs[mask]], axis=0
    )


# ----------------------------------------------------------------------------
# CGCoupler._init_params, reproduced in NumPy (parity=0, overlap_out=True,
# trunc_in=True defaults of the PyTorch module).
# ----------------------------------------------------------------------------
def cg_coupler_init(metadata_1, metadata_2, parity=0, overlap_out=True, trunc_in=True):
    m1 = np.asarray(metadata_1, dtype=np.int64)
    m2 = np.asarray(metadata_2, dtype=np.int64)
    assert m1.ndim == 1 and m2.ndim == 1 and m1.shape[0] == m2.shape[0]

    metadata_in = np.stack([m1, m2], axis=0)                    # (2, L)
    max_n_out = np.maximum(m1, m2)
    L = metadata_in.shape[1]
    n_irreps_per_l = np.arange(L) * 2 + 1
    repid_offsets_in = np.cumsum(metadata_in * n_irreps_per_l[None, :], axis=1)
    repid_offsets_in = np.concatenate(
        [np.zeros((2, 1), dtype=np.int64), repid_offsets_in[:, :-1]], axis=1
    )

    max_l = L - 1
    valid_coupling_ids = []
    metadata_out = np.zeros_like(max_n_out)
    for lout in range(max_l + 1):
        for lin1 in range(max_l + 1):
            for lin2 in range(max_l + 1):
                coupling_parity = (-1) ** (lout + lin1 + lin2)
                if parity != 0 and parity != coupling_parity:
                    continue
                if lin1 + lin2 < lout or abs(lin1 - lin2) > lout:
                    continue
                if trunc_in:
                    if lin1 + lin2 > max_l:
                        continue
                    degeneracy = min(metadata_in[0, lin1], metadata_in[1, lin2],
                                     max_n_out[lin1 + lin2])
                else:
                    if lout > max_l:
                        continue
                    degeneracy = min(metadata_in[0, lin1], metadata_in[1, lin2],
                                     max_n_out[lout])
                if not overlap_out:
                    metadata_out[lout] += degeneracy
                elif degeneracy > metadata_out[lout]:
                    metadata_out[lout] = degeneracy
                if degeneracy > 0:
                    valid_coupling_ids.append((lout, lin1, lin2, int(degeneracy)))

    repid_offsets_out = np.cumsum(metadata_out * n_irreps_per_l)
    repid_offsets_out = np.concatenate(
        [np.zeros((1,), dtype=np.int64), repid_offsets_out[:-1]]
    )

    cg_tilde, repids_in1, repids_in2, repids_out = [], [], [], []
    out_ns_offset, lout_last = 0, 0
    for lout, lin1, lin2, degeneracy in valid_coupling_ids:
        if lout > lout_last:
            out_ns_offset = 0
        cg_source = get_rsh_cg_coefficients(lin1, lin2, lout)          # (4, nnz)
        cg_segment = np.repeat(cg_source, degeneracy, axis=1)          # repeat_interleave dim=1
        ns_segment = np.tile(np.arange(degeneracy), cg_source.shape[1])
        r_in1 = (repid_offsets_in[0, lin1]
                 + (cg_segment[0] + lin1) * metadata_in[0, lin1] + ns_segment)
        r_in2 = (repid_offsets_in[1, lin2]
                 + (cg_segment[1] + lin2) * metadata_in[1, lin2] + ns_segment)
        r_out = (repid_offsets_out[lout]
                 + (cg_segment[2] + lout) * metadata_out[lout] + out_ns_offset + ns_segment)
        cg_tilde.append(cg_segment[3])
        repids_in1.append(np.round(r_in1).astype(np.int64))
        repids_in2.append(np.round(r_in2).astype(np.int64))
        repids_out.append(np.round(r_out).astype(np.int64))
        if not overlap_out:
            out_ns_offset += degeneracy
        lout_last = lout

    return dict(
        cg_tilde=np.concatenate(cg_tilde).astype(np.float32),
        repids_in1=np.concatenate(repids_in1),
        repids_in2=np.concatenate(repids_in2),
        repids_out=np.concatenate(repids_out),
        metadata_out=metadata_out,
        dim_in1=int(np.sum(m1 * n_irreps_per_l)),
        dim_in2=int(np.sum(m2 * n_irreps_per_l)),
        dim_out=int(np.sum(metadata_out * n_irreps_per_l)),
    )


# ----------------------------------------------------------------------------
# Host-side selection matrices: lane-padded (multiples of 128), CG folded into
# the scatter matrix (one nonzero per row -> mathematically identical).
# ----------------------------------------------------------------------------
def _round_up(x, m):
    return ((x + m - 1) // m) * m


def build_selection_matrices(params, lane=128, min_k=None):
    r1, r2, ro = params["repids_in1"], params["repids_in2"], params["repids_out"]
    cg = params["cg_tilde"].astype(np.float32)
    K = r1.shape[0]
    D1, D2, Dout = params["dim_in1"], params["dim_in2"], params["dim_out"]
    Kp = _round_up(max(K, min_k or 1, 1), lane)
    D1p = _round_up(max(D1, 1), lane)
    D2p = _round_up(max(D2, 1), lane)
    Doutp = _round_up(max(Dout, 1), lane)

    g1 = np.zeros((D1p, Kp), dtype=np.float32)
    g2 = np.zeros((D2p, Kp), dtype=np.float32)
    s = np.zeros((Kp, Doutp), dtype=np.float32)
    k = np.arange(K)
    g1[r1, k] = 1.0
    g2[r2, k] = 1.0
    s[k, ro] = cg            # CG weights folded into the scatter matrix
    return g1, g2, s


# ----------------------------------------------------------------------------
# Pallas kernels.
# ----------------------------------------------------------------------------
def cg_kernel_resident(x1_ref, x2_ref, g1_ref, g2_ref, s_ref, o_ref):
    """Constants (g1, g2, s) live whole in VMEM; single pass over K."""
    x1t = jnp.dot(x1_ref[...], g1_ref[...], preferred_element_type=jnp.float32)
    x2t = jnp.dot(x2_ref[...], g2_ref[...], preferred_element_type=jnp.float32)
    o_ref[...] = jnp.dot(x1t * x2t, s_ref[...],
                         preferred_element_type=jnp.float32).astype(o_ref.dtype)


def cg_kernel_ktiled(x1_ref, x2_ref, g1_ref, g2_ref, s_ref, o_ref, acc_ref):
    """K is tiled on an 'arbitrary' grid axis; partial scatter sums accumulate
    in a (tb, Doutp) f32 VMEM scratch."""
    @pl.when(pl.program_id(1) == 0)
    def _():
        acc_ref[...] = jnp.zeros_like(acc_ref)

    x1t = jnp.dot(x1_ref[...], g1_ref[...], preferred_element_type=jnp.float32)
    x2t = jnp.dot(x2_ref[...], g2_ref[...], preferred_element_type=jnp.float32)
    acc_ref[...] += jnp.dot(x1t * x2t, s_ref[...], preferred_element_type=jnp.float32)

    @pl.when(pl.program_id(1) == pl.num_programs(1) - 1)
    def _():
        o_ref[...] = acc_ref[...].astype(o_ref.dtype)


# ----------------------------------------------------------------------------
# VMEM budgeting & tile selection (static, deterministic — no try/except path switch).
# ----------------------------------------------------------------------------
_HEADROOM = 4 << 20   # MXU staging / compiler internals


def _vmem_budget_bytes():
    cap = 64 << 20     # conservative default (v7x per-core VMEM)
    try:
        info = pltpu.get_tpu_info()
        c = getattr(info, "vmem_capacity_bytes", None)
        if c:
            cap = int(c)
    except Exception:
        pass
    # ~52 MiB on 64 MiB parts (v7x), ~108 MiB on 128 MiB parts (v5e/v6e).
    return max(16 << 20, min(cap - (12 << 20), int(cap * 0.85)))


def _est_resident(tb, Kp, D1p, D2p, Doutp):
    return (4 * Kp * (D1p + D2p + Doutp)          # single-buffered resident constants
            + 2 * 4 * tb * (D1p + D2p + Doutp)    # double-buffered batch/out tiles
            + 2 * 4 * tb * Kp                     # x1t, x2t f32 intermediates
            + _HEADROOM)


def _est_ktiled(tb, tk, D1p, D2p, Doutp):
    return (2 * 4 * tk * (D1p + D2p + Doutp)      # double-buffered constant K-tiles
            + 2 * 4 * tb * (D1p + D2p + Doutp)    # double-buffered batch/out tiles
            + 4 * tb * Doutp                      # f32 accumulator scratch
            + 2 * 4 * tb * tk                     # x1t, x2t f32 intermediates
            + _HEADROOM)


def _choose_tb(B, tb_req):
    B8 = _round_up(max(B, 1), 8)
    tb = min(_round_up(max(tb_req, 8), 8), B8)
    # v7x has 2 TensorCores sharing the chip: keep >= 2 steps on the "parallel"
    # batch axis whenever the batch allows it (free on single-TC v5e/v6e).
    if B8 >= 16 and tb > B8 // 2:
        tb = max(8, (B8 // 2) // 8 * 8)
    return tb


def _choose_tk(Kp, tb, D1p, D2p, Doutp, budget, target_tk):
    target_tk = max(128, (target_tk // 128) * 128)
    best = None
    t = 128
    while t <= Kp:
        if (Kp % t == 0 and t <= target_tk
                and _est_ktiled(tb, t, D1p, D2p, Doutp) <= budget):
            best = t
        t += 128
    return best


# ----------------------------------------------------------------------------
# pallas_call wrapper (jitted; padding of x1/x2 fuses under jit).
# ----------------------------------------------------------------------------
@partial(jax.jit, static_argnames=("dim_out", "tb", "tk", "resident", "vmem_limit"))
def _cg_couple_impl(x1, x2, g1, g2, s, *, dim_out, tb, tk, resident, vmem_limit):
    B, D1 = x1.shape
    _, D2 = x2.shape
    D1p, Kp = g1.shape
    D2p, Kp2 = g2.shape
    Kp3, Doutp = s.shape
    assert Kp == Kp2 == Kp3

    Bp = _round_up(B, tb)
    if (Bp, D1p) != x1.shape:
        x1 = jnp.pad(x1, ((0, Bp - B), (0, D1p - D1)))
    if (Bp, D2p) != x2.shape:
        x2 = jnp.pad(x2, ((0, Bp - B), (0, D2p - D2)))

    flops = 2 * Bp * Kp * (D1p + D2p + Doutp) + Bp * Kp
    bytes_accessed = 4 * (Bp * (D1p + D2p + Doutp) + Kp * (D1p + D2p + Doutp))
    cost = pl.CostEstimate(flops=int(flops), transcendentals=0,
                           bytes_accessed=int(bytes_accessed))

    if resident:
        out = pl.pallas_call(
            cg_kernel_resident,
            out_shape=jax.ShapeDtypeStruct((Bp, Doutp), x1.dtype),
            grid_spec=pltpu.PrefetchScalarGridSpec(
                num_scalar_prefetch=0,
                grid=(Bp // tb,),
                in_specs=[
                    pl.BlockSpec((tb, D1p), lambda i: (i, 0)),
                    pl.BlockSpec((tb, D2p), lambda i: (i, 0)),
                    # grid-invariant constants: whole-array, single-buffered VMEM residents
                    pl.BlockSpec(memory_space=pltpu.MemorySpace.VMEM),
                    pl.BlockSpec(memory_space=pltpu.MemorySpace.VMEM),
                    pl.BlockSpec(memory_space=pltpu.MemorySpace.VMEM),
                ],
                out_specs=pl.BlockSpec((tb, Doutp), lambda i: (i, 0)),
            ),
            compiler_params=pltpu.CompilerParams(
                dimension_semantics=("parallel",),
                vmem_limit_bytes=vmem_limit,
            ),
            cost_estimate=cost,
        )(x1, x2, g1, g2, s)
    else:
        out = pl.pallas_call(
            cg_kernel_ktiled,
            out_shape=jax.ShapeDtypeStruct((Bp, Doutp), x1.dtype),
            grid_spec=pltpu.PrefetchScalarGridSpec(
                num_scalar_prefetch=0,
                grid=(Bp // tb, Kp // tk),
                in_specs=[
                    pl.BlockSpec((tb, D1p), lambda i, k: (i, 0)),
                    pl.BlockSpec((tb, D2p), lambda i, k: (i, 0)),
                    pl.BlockSpec((D1p, tk), lambda i, k: (0, k)),
                    pl.BlockSpec((D2p, tk), lambda i, k: (0, k)),
                    pl.BlockSpec((tk, Doutp), lambda i, k: (k, 0)),
                ],
                out_specs=pl.BlockSpec((tb, Doutp), lambda i, k: (i, 0)),
                scratch_shapes=[pltpu.VMEM((tb, Doutp), jnp.float32)],
            ),
            compiler_params=pltpu.CompilerParams(
                dimension_semantics=("parallel", "arbitrary"),
                vmem_limit_bytes=vmem_limit,
            ),
            cost_estimate=cost,
        )(x1, x2, g1, g2, s)

    return out[:B, :dim_out]


def cg_couple(x1, x2, g1, g2, s, dim_out, *, tb=512, target_tk=512, force_ktiled=False):
    """CG coupling forward. Picks VMEM-resident constants when they (plus the
    intermediates) statically fit the per-chip VMEM budget, otherwise a K-tiled
    accumulator path."""
    B, _ = x1.shape
    D1p, Kp = g1.shape
    D2p, _ = g2.shape
    _, Doutp = s.shape

    budget = _vmem_budget_bytes()
    tb_sel = _choose_tb(B, tb)

    resident = (not force_ktiled) and (_est_resident(tb_sel, Kp, D1p, D2p, Doutp) <= budget)

    tk_sel = Kp
    if not resident:
        while True:
            tk = _choose_tk(Kp, tb_sel, D1p, D2p, Doutp, budget, target_tk)
            if tk is not None:
                tk_sel = tk
                break
            if tb_sel <= 8:
                tk_sel = 128   # smallest legal tiles; vmem_limit still capped at budget
                break
            tb_sel = max(8, (tb_sel // 2) // 8 * 8)

    return _cg_couple_impl(x1, x2, g1, g2, s, dim_out=dim_out, tb=tb_sel, tk=tk_sel,
                           resident=resident, vmem_limit=int(budget))


# ----------------------------------------------------------------------------
# Pure NumPy reference matching the PyTorch forward semantics.
# ----------------------------------------------------------------------------
def reference_forward(x1, x2, params):
    x1t = x1[:, params["repids_in1"]]
    x2t = x2[:, params["repids_in2"]]
    out_tilde = x1t * x2t * params["cg_tilde"][None, :]
    out = np.zeros((x1.shape[0], params["dim_out"]), dtype=x1.dtype)
    np.add.at(out, (slice(None), params["repids_out"]), out_tilde)
    return out


if __name__ == "__main__":
    # Small shapes: metadata length 3 -> l in {0, 1, 2}; exercises non-trivial CG
    # values, duplicate scatter indices and the overlap_out accumulation path.
    metadata_1 = [4, 2, 1]
    metadata_2 = [4, 2, 1]
    params = cg_coupler_init(metadata_1, metadata_2, parity=0, overlap_out=True, trunc_in=True)

    B = 16
    D1, D2, Dout = params["dim_in1"], params["dim_in2"], params["dim_out"]

    key = jax.random.PRNGKey(0)
    k1, k2 = jax.random.split(key)
    x1 = jax.random.normal(k1, (B, D1), dtype=jnp.float32)
    x2 = jax.random.normal(k2, (B, D2), dtype=jnp.float32)

    ref = reference_forward(np.asarray(x1), np.asarray(x2), params)

    # Path 1 (auto): constants fit -> VMEM-resident, single-buffered constants.
    g1, g2, s = build_selection_matrices(params)
    g1, g2, s = map(jnp.asarray, (g1, g2, s))
    out = jax.block_until_ready(cg_couple(x1, x2, g1, g2, s, Dout))
    assert out.shape == (B, Dout)
    np.testing.assert_allclose(np.asarray(out), ref, rtol=1e-5, atol=1e-5)

    # Path 2 (forced K-tiled): pad K to 256 so tk=128 gives 2 accumulation steps,
    # exercising the large-CG-table / v7x path (zero-padded K columns are a no-op).
    g1k, g2k, sk = build_selection_matrices(params, min_k=256)
    g1k, g2k, sk = map(jnp.asarray, (g1k, g2k, sk))
    out_kt = jax.block_until_ready(
        cg_couple(x1, x2, g1k, g2k, sk, Dout, target_tk=128, force_ktiled=True))
    assert out_kt.shape == (B, Dout)
    np.testing.assert_allclose(np.asarray(out_kt), ref, rtol=1e-5, atol=1e-5)

    print("KERNEL_OK")
</pallas_src>

<mosaic_0001>
module attributes {stable_mosaic.version = 11 : i64} {
  func.func @cg_kernel_resident(%arg0: i32, %arg1: memref<8x128xf32, #tpu.memory_space<vmem>>, %arg2: memref<8x128xf32, #tpu.memory_space<vmem>>, %arg3: memref<128x128xf32, #tpu.memory_space<vmem>>, %arg4: memref<128x128xf32, #tpu.memory_space<vmem>>, %arg5: memref<128x128xf32, #tpu.memory_space<vmem>>, %arg6: memref<8x128xf32, #tpu.memory_space<vmem>>) attributes {dimension_semantics = [#tpu.dimension_semantics<parallel>], iteration_bounds = array<i64: 2>, scalar_prefetch = 0 : i64, scratch_operands = 0 : i64, tpu.core_type = #tpu.core_type<tc>, window_params = [{transform_indices = @transform_0, window_bounds = array<i64: 8, 128>}, {transform_indices = @transform_1, window_bounds = array<i64: 8, 128>}, {pipeline_mode = #tpu.pipeline_mode<synchronous>, transform_indices = @transform_2, window_bounds = array<i64: 128, 128>}, {pipeline_mode = #tpu.pipeline_mode<synchronous>, transform_indices = @transform_3, window_bounds = array<i64: 128, 128>}, {pipeline_mode = #tpu.pipeline_mode<synchronous>, transform_indices = @transform_4, window_bounds = array<i64: 128, 128>}, {transform_indices = @transform_5, window_bounds = array<i64: 8, 128>}]} {
    %c0 = arith.constant 0 : index
    %c0_0 = arith.constant 0 : index
    %0 = vector.load %arg1[%c0, %c0_0] : memref<8x128xf32, #tpu.memory_space<vmem>>, vector<8x128xf32>
    %c0_1 = arith.constant 0 : index
    %c0_2 = arith.constant 0 : index
    %1 = vector.load %arg3[%c0_1, %c0_2] : memref<128x128xf32, #tpu.memory_space<vmem>>, vector<128x128xf32>
    %cst = arith.constant dense<0.000000e+00> : vector<8x128xf32>
    %2 = tpu.matmul %0, %1, %cst {dimension_numbers = #tpu.dot_dimension_numbers<[1], [0], [0], [1], [0, 0, 1, 1], [], []>} : vector<8x128xf32>, vector<128x128xf32>, vector<8x128xf32> -> vector<8x128xf32>
    %c0_3 = arith.constant 0 : index
    %c0_4 = arith.constant 0 : index
    %3 = vector.load %arg2[%c0_3, %c0_4] : memref<8x128xf32, #tpu.memory_space<vmem>>, vector<8x128xf32>
    %c0_5 = arith.constant 0 : index
    %c0_6 = arith.constant 0 : index
    %4 = vector.load %arg4[%c0_5, %c0_6] : memref<128x128xf32, #tpu.memory_space<vmem>>, vector<128x128xf32>
    %cst_7 = arith.constant dense<0.000000e+00> : vector<8x128xf32>
    %5 = tpu.matmul %3, %4, %cst_7 {dimension_numbers = #tpu.dot_dimension_numbers<[1], [0], [0], [1], [0, 0, 1, 1], [], []>} : vector<8x128xf32>, vector<128x128xf32>, vector<8x128xf32> -> vector<8x128xf32>
    %6 = arith.mulf %2, %5 : vector<8x128xf32>
    %c0_8 = arith.constant 0 : index
    %c0_9 = arith.constant 0 : index
    %7 = vector.load %arg5[%c0_8, %c0_9] : memref<128x128xf32, #tpu.memory_space<vmem>>, vector<128x128xf32>
    %cst_10 = arith.constant dense<0.000000e+00> : vector<8x128xf32>
    %8 = tpu.matmul %6, %7, %cst_10 {dimension_numbers = #tpu.dot_dimension_numbers<[1], [0], [0], [1], [0, 0, 1, 1], [], []>} : vector<8x128xf32>, vector<128x128xf32>, vector<8x128xf32> -> vector<8x128xf32>
    %c0_11 = arith.constant 0 : index
    %c0_12 = arith.constant 0 : index
    %9 = vector.load %arg6[%c0_11, %c0_12] : memref<8x128xf32, #tpu.memory_space<vmem>>, vector<8x128xf32>
    tpu.vector_store %arg6[%c0_11, %c0_12], %8 {strides = array<i32>} : memref<8x128xf32, #tpu.memory_space<vmem>>, vector<8x128xf32>,
    return
  }
  func.func @transform_0(%arg0: i32) -> (i32, i32) {
    %c0_i32 = arith.constant 0 : i32
    %c0_i32_0 = arith.constant 0 : i32
    return %arg0, %c0_i32 : i32, i32
  }
  func.func @transform_1(%arg0: i32) -> (i32, i32) {
    %c0_i32 = arith.constant 0 : i32
    %c0_i32_0 = arith.constant 0 : i32
    return %arg0, %c0_i32 : i32, i32
  }
  func.func @transform_2(%arg0: i32) -> (i32, i32) {
    %c0_i32 = arith.constant 0 : i32
    %c0_i32_0 = arith.constant 0 : i32
    %c0_i32_1 = arith.constant 0 : i32
    return %c0_i32, %c0_i32_0 : i32, i32
  }
  func.func @transform_3(%arg0: i32) -> (i32, i32) {
    %c0_i32 = arith.constant 0 : i32
    %c0_i32_0 = arith.constant 0 : i32
    %c0_i32_1 = arith.constant 0 : i32
    return %c0_i32, %c0_i32_0 : i32, i32
  }
  func.func @transform_4(%arg0: i32) -> (i32, i32) {
    %c0_i32 = arith.constant 0 : i32
    %c0_i32_0 = arith.constant 0 : i32
    %c0_i32_1 = arith.constant 0 : i32
    return %c0_i32, %c0_i32_0 : i32, i32
  }
  func.func @transform_5(%arg0: i32) -> (i32, i32) {
    %c0_i32 = arith.constant 0 : i32
    %c0_i32_0 = arith.constant 0 : i32
    return %arg0, %c0_i32 : i32, i32
  }
}

</mosaic_0001>

<bundles_post_ra>
// kernel: _cg_couple_impl.1
= control target key start
LH: loop header
LB: loop body
LE: loop exit
PB: predicated region body
PF: predicated region fallthrough
CT: control target
= control target key end

     0   :  { %10 = vsyncpa [#allocation3], 0  ;;  %s1416_s0 = inlined_call_operand.vmem [shape: f32[16,128], index: 0, kind: input, shape index: {}]   ;;  %s1417_s1 = inlined_call_operand.vmem [shape: f32[16,128], index: 1, kind: input, shape index: {}]   ;;  %s1418_s2 = inlined_call_operand.hbm [shape: f32[128,128], index: 2, kind: input, shape index: {}]   ;;  %s1419_s3 = inlined_call_operand.hbm [shape: f32[128,128], index: 3, kind: input, shape index: {}]   ;;  %s1420_s4 = inlined_call_operand.hbm [shape: f32[128,128], index: 4, kind: input, shape index: {}]   ;;  %s1421_s5 = inlined_call_operand.hbm [shape: f32[16,128], index: 5, kind: output, shape index: {}]  }
   0x1   :  { %11 = vsyncpa [#allocation6], 0 }
   0x2   :  { %12 = vsyncpa [#allocation4], 0 }
   0x3   :  { %14 = vsyncpa [#allocation4 + $0x1], 0  ;;  %s1174_s18 = smov 0   ;;  %s1176_s19 = smov 0  }
   0x4   :  { %s1178_s20 = smov 0   ;;  %s1180_s21 = smov 0  }
   0x5 LB: > { %s1195_s22 = sadd.s32 4294967295, %s1133_s21   ;;  %s659_s23 = sadd.s32 4294967294, %s1133_s21   ;;  %s1133_s21 = sphi %s1180_s21, %s1442_s21   ;;  %s1129_s20 = sphi %s1178_s20, %s1441_s20   ;;  %s1125_s19 = sphi %s1176_s19, %s1440_s19   ;;  %s1121_s18 = sphi %s1174_s18, %s1439_s18  }
   0x6   : > { %s1199_s24 = sadd.s32 1, %s1133_s21   ;;  %s142_s25 = sadd.s32 1, %s1129_s20 }
   0x7   : > { %s139_s26 = ssub.s32 %s1133_s21, %s1199_s24  ;;  %p152_p0 = scmp.ne.s32.totalorder %s1129_s20, %s1125_s19 }
   0x8   : > { %p140_p1 = scmp.eq.s32.totalorder %s139_s26, 0  ;;  %p153_p2 = scmp.eq.s32.totalorder %s1195_s22, 1 }
   0x9   : > { %p158_p3 = scmp.ne.s32.totalorder %s1125_s19, %s1121_s18  ;;  %p159_p4 = scmp.eq.s32.totalorder %s659_s23, 1 }
   0xa   : > { %s1210_s27 = scalar_select %p140_p1, %s1129_s20, %s142_s25  }
   0xb   : > { %p1212_p5 = por %p153_p2, %p152_p0  ;;  %p1216_p6 = por %p159_p4, %p158_p3 }
   0xc   : > { %1425 = sst [smem:[#allocation12_spill]] %s1210_s27  ;;  %p660_p7 = scmp.ge.s32.totalorder %s1133_s21, 1 }
   0xd   : > { %s1426_s28 = scalar_select %p1212_p5, 1, 0 }
   0xe   : > { %s1427_s29 = scalar_select %p1216_p6, 1, 0 }
   0xf   : > { %p166_p8 = scmp.lt.s32.totalorder %s1133_s21, 3  ;;  %p1422_p9 = scmp.eq.s32.totalorder %s1195_s22, 0 }
  0x10   : > { %s1135_s6 = smov [#allocation5]   ;;  %s1136_s9 = smov [#allocation2]  }
  0x11   : > { %p1223_p10 = pnand %p660_p7, %p166_p8  ;;  %s191_s7 = sshll.u32 %s1135_s6, 4  ;;  %s1229_s7 = int_to_ptr.vmem [resolvable:$true] %s191_s7 }
  0x12   : > { %s178_s10 = sshll.u32 %s1136_s9, 4  ;;  %s1137_s11 = smov [#allocation7]   ;;  %s1237_s10 = int_to_ptr.vmem [resolvable:$true] %s178_s10 }
  0x13   : > { %s1428_s30 = scalar_select %p1223_p10, 1, 0 }
  0x14   : > { %p918_p11 = pneg %p1223_p10  ;;  %s1239_s12 = sshll.u32 %s1137_s11, 4  ;;  %s205_s12 = int_to_ptr.vmem [resolvable:$true] %s1239_s12 }
  0x15   : > { %s979_s15 = scalar_lea.hbm %s1419_s3, 2048 }
  0x16   : > { %p1233_p12 = pnand %p1422_p9, %p918_p11  ;;  %p980_p13 = scmp.ne.s32.totalorder %s1419_s3, %s979_s15 }
  0x17   : > { %p986_p3 = scmp.lt.u32.totalorder %s979_s15, %s1419_s3 }
  0x18   : > { %p1249_p0 = pneg %p1233_p12 }
  0x1a   : > { %p982_p1 = pnand %p1249_p0, %p980_p13 }
  0x1c   : > { %p983_p2 = pneg %p982_p1 }
  0x1e   : > { %p988_p4 = pnand %p986_p3, %p983_p2 }
  0x20   : > { %991 = shalt.err (!%p988_p4)
}
  0x21   : > { %s992_s6 = scalar_lea.vmem %s1229_s7, 2048  ;;  %p1000_p9 = scmp.lt.s32.totalorder %s1229_s7, %s1229_s7 }
  0x22   : > { %p993_p7 = scmp.ne.s32.totalorder %s1229_s7, %s992_s6  ;;  %p1001_p6 = scmp.lt.s32.totalorder %s992_s6, %s992_s6 }
  0x24   : > { %p995_p8 = pnand %p993_p7, %p1249_p0  ;;  %p1002_p13 = por %p1001_p6, %p1000_p9 }
  0x26   : > { %p996_p11 = pneg %p995_p8 }
  0x28   : > { %p1003_p1 = pnand %p1002_p13, %p996_p11 }
  0x2a   : > { %1006 = shalt.err (!%p1003_p1)
}
  0x2b   : > { %s1138_s9 = smov 128   ;;  %s1139_s11 = smov 8  }
  0x2c   : > { %924 = dma.hbm_to_vmem [thread:$0]  (!%p1233_p12), %s1419_s3, 2048, %s1229_s7, [#allocation6], %s1138_s9, %s1138_s9, %s1139_s11  }
  0x2d   : > { %s1007_s17 = scalar_lea.hbm %s1418_s2, 2048 }
  0x2e   : > { %p1008_p6 = scmp.ne.s32.totalorder %s1418_s2, %s1007_s17  ;;  %p1014_p3 = scmp.lt.u32.totalorder %s1007_s17, %s1418_s2 }
  0x30   : > { %p1010_p9 = pnand %p1008_p6, %p1249_p0 }
  0x32   : > { %p1011_p2 = pneg %p1010_p9 }
  0x34   : > { %p1016_p4 = pnand %p1014_p3, %p1011_p2 }
  0x36   : > { %1019 = shalt.err (!%p1016_p4)
}
  0x37   : > { %s1020_s7 = scalar_lea.vmem %s1237_s10, 2048  ;;  %p1028_p13 = scmp.lt.s32.totalorder %s1237_s10, %s1237_s10 }
  0x38   : > { %p1021_p7 = scmp.ne.s32.totalorder %s1237_s10, %s1020_s7  ;;  %p1029_p1 = scmp.lt.s32.totalorder %s1020_s7, %s1020_s7 }
  0x3a   : > { %p1023_p8 = pnand %p1021_p7, %p1249_p0  ;;  %p1030_p6 = por %p1029_p1, %p1028_p13 }
  0x3c   : > { %p1024_p11 = pneg %p1023_p8 }
  0x3e   : > { %p1031_p9 = pnand %p1030_p6, %p1024_p11 }
  0x40   : > { %1034 = shalt.err (!%p1031_p9)
}
  0x41   : > { %921 = dma.hbm_to_vmem [thread:$0]  (!%p1233_p12), %s1418_s2, 2048, %s1237_s10, [#allocation3], %s1138_s9, %s1138_s9, %s1139_s11  }
  0x42   : > { %s1035_s16 = scalar_lea.hbm %s1420_s4, 2048 }
  0x43   : > { %p1036_p2 = scmp.ne.s32.totalorder %s1420_s4, %s1035_s16  ;;  %p1042_p7 = scmp.lt.u32.totalorder %s1035_s16, %s1420_s4 }
  0x45   : > { %p1038_p3 = pnand %p1036_p2, %p1249_p0 }
  0x47   : > { %p1039_p4 = pneg %p1038_p3 }
  0x49   : > { %p1044_p8 = pnand %p1042_p7, %p1039_p4 }
  0x4b   : > { %1047 = shalt.err (!%p1044_p8)
}
  0x4c   : > { %s1048_s7 = scalar_lea.vmem %s205_s12, 2048  ;;  %p1056_p6 = scmp.lt.s32.totalorder %s205_s12, %s205_s12 }
  0x4d   : > { %p1049_p11 = scmp.ne.s32.totalorder %s205_s12, %s1048_s7  ;;  %p1057_p9 = scmp.lt.s32.totalorder %s1048_s7, %s1048_s7 }
  0x4f   : > { %p1051_p13 = pnand %p1049_p11, %p1249_p0  ;;  %p1058_p5 = por %p1057_p9, %p1056_p6 }
  0x51   : > { %p1052_p1 = pneg %p1051_p13 }
  0x53   : > { %p1059_p10 = pnand %p1058_p5, %p1052_p1 }
  0x55   : > { %1062 = shalt.err (!%p1059_p10)
}
  0x56   : > { %927 = dma.hbm_to_vmem [thread:$0]  (!%p1233_p12), %s1420_s4, 2048, %s205_s12, [#allocation6], %s1138_s9, %s1138_s9, %s1139_s11  }
  0x57   : > { %p1431_p2 = scmp.ne.s32.totalorder %s1428_s30, 0 }
  0x58   : > { %p1432_p0 = scmp.eq.s32.totalorder (!%p1431_p2), %s1195_s22, 0 }
  0x59   : > { %234 = sbr.rel (%p1431_p2) target bundleno = 575 (0x23f), region = 40 }
  0x60   : > { %1108 = dma.done.wait (%p1432_p0), [#allocation3], 2048   ;;  %p1433_p3 = pmov %p1432_p0 }
  0x61   : > { %p1434_p5 = pmov %p1432_p0 }
  0x62   : > { %1110 = vsyncadd (%p1433_p3), [#allocation3], 4294965248 }
  0x63   : > { %1112 = dma.done.wait (%p1434_p5), [#allocation6], 4096   ;;  %p1435_p10 = pmov %p1432_p0 }
  0x64   : > { %v1140_v0 = vmov 0.0|0.0   ;;  %vm1141_vm0 = vmmov 0   ;;  %v1142_v1 = vmov 0.0   ;;  %v282_v2 = vld [vmem:[#allocation2] sm:$0xff]  ;;  %v283_v3 = vld [vmem:[#allocation2 + $0x8] sm:$0xff]  ;;  %v284_v7 = vld [vmem:[#allocation2 + $0x10] sm:$0xff] }
  0x65   : > { %1114 = vsyncadd (%p1435_p10), [#allocation6], 4294963200  ;;  %832 = vmatprep.subr.bf16.mxu0 %v1140_v0  ;;  %856 = vmatprep.subr.bf16.mxu1 %v1140_v0  ;;  %v369_v4 = vld [vmem:[#allocation5] sm:$0xff]  ;;  %v833_v5 = vpack.c.bf16 %v283_v3, %v282_v2  ;;  %v370_v6 = vld [vmem:[#allocation5 + $0x8] sm:$0xff]  ;;  %p273_p12 = scmp.lt.s32.totalorder %s1195_s22, 1  ;;  %s270_s15 = sand.u32 1, %s1125_s19  }
  0x66   : > { %759 = vmatprep.mubr.msk.f32.mxu0 %vm1141_vm0, %v1142_v1  ;;  %794 = vmatprep.mubr.msk.f32.mxu1 %vm1141_vm0, %v1142_v1  ;;  %v285_v8 = vld [vmem:[#allocation2 + $0x18] sm:$0xff]  ;;  %v857_v9 = vpack.c.bf16 %v370_v6, %v369_v4  ;;  %v371_v10 = vld [vmem:[#allocation5 + $0x10] sm:$0xff]  ;;  %v286_v14 = vld [vmem:[#allocation2 + $0x20] sm:$0xff]  ;;  %s669_s16 = sshll.u32 %s270_s15, 3  ;;  %s673_s26 = sshll.u32 %s1195_s22, 7 }
  0x67   : > { %v372_v11 = vld [vmem:[#allocation5 + $0x18] sm:$0xff]  ;;  %834 = vmatpush3.bf16.msra.mxu0 %v833_v5  ;;  %v836_v12 = vpack.c.bf16 %v285_v8, %v284_v7  ;;  %v287_v15 = vld [vmem:[#allocation2 + $0x28] sm:$0xff]  ;;  %v373_v16 = vld [vmem:[#allocation5 + $0x20] sm:$0xff]  ;;  %s274_s30 = scalar_select %p273_p12, %s1195_s22, 1 }
  0x68   : > { %858 = vmatpush3.bf16.msra.mxu1 %v857_v9  ;;  %835 = vmatprep.subr.bf16.mxu0 %v1140_v0  ;;  %v860_v13 = vpack.c.bf16 %v372_v11, %v371_v10  ;;  %v374_v17 = vld [vmem:[#allocation5 + $0x28] sm:$0xff]  ;;  %v839_v18 = vpack.c.bf16 %v287_v15, %v286_v14  ;;  %v288_v20 = vld [vmem:[#allocation2 + $0x30] sm:$0xff]  ;;  %v289_v21 = vld [vmem:[#allocation2 + $0x38] sm:$0xff]  ;;  %s272_s17 = scalar_lea.vmem [#allocation8], %s669_s16  ;;  %s1376_s10 = scalar_lea.hbm %s1421_s5, %s673_s26 }
  0x69   : > { %859 = vmatprep.subr.bf16.mxu1 %v1140_v0  ;;  %v863_v19 = vpack.c.bf16 %v374_v17, %v373_v16  ;;  %v375_v22 = vld [vmem:[#allocation5 + $0x30] sm:$0xff]  ;;  %v376_v23 = vld [vmem:[#allocation5 + $0x38] sm:$0xff]  ;;  %v842_v24 = vpack.c.bf16 %v289_v21, %v288_v20  ;;  %v290_v26 = vld [vmem:[#allocation2 + $0x40] sm:$0xff]  ;;  %s670_s8 = sshll.u32 %s274_s30, 3  ;;  %s557_s25 = sshll.u32 %s272_s17, 4  ;;  %s1371_s25 = int_to_ptr.vmem [resolvable:$true] %s557_s25 }
  0x6a   : > { %v866_v25 = vpack.c.bf16 %v376_v23, %v375_v22  ;;  %v291_v27 = vld [vmem:[#allocation2 + $0x48] sm:$0xff]  ;;  %v377_v28 = vld [vmem:[#allocation5 + $0x40] sm:$0xff]  ;;  %v292_v32 = vld [vmem:[#allocation2 + $0x50] sm:$0xff]  ;;  %s276_s9 = scalar_lea.vmem %s1416_s0, %s670_s8  ;;  %s280_s14 = scalar_lea.vmem %s1417_s1, %s670_s8 }
  0x6b   : > { %837 = vmatpush3.bf16.msra.mxu0 %v836_v12  ;;  %v378_v29 = vld [vmem:[#allocation5 + $0x48] sm:$0xff]  ;;  %v845_v30 = vpack.c.bf16 %v291_v27, %v290_v26  ;;  %v293_v33 = vld [vmem:[#allocation2 + $0x58] sm:$0xff]  ;;  %v379_v34 = vld [vmem:[#allocation5 + $0x50] sm:$0xff]  ;;  %s544_s27 = scalar_lea.sflag [#allocation4], %s270_s15  ;;  %s1063_s30 = scalar_lea.vmem %s1371_s25, 128 }
  0x6c   : > { %861 = vmatpush3.bf16.msra.mxu1 %v860_v13  ;;  %838 = vmatprep.subr.bf16.mxu0 %v1140_v0  ;;  %v869_v31 = vpack.c.bf16 %v378_v29, %v377_v28  ;;  %v380_v35 = vld [vmem:[#allocation5 + $0x58] sm:$0xff]  ;;  %v848_v36 = vpack.c.bf16 %v293_v33, %v292_v32  ;;  %v294_v38 = vld [vmem:[#allocation2 + $0x60] sm:$0xff]  ;;  %v295_v39 = vld [vmem:[#allocation2 + $0x68] sm:$0xff]  ;;  %p1064_p4 = scmp.ne.s32.totalorder %s1371_s25, %s1063_s30  ;;  %p1436_p7 = scmp.ne.s32.totalorder %s1426_s28, 0 }
  0x6d   : > { %862 = vmatprep.subr.bf16.mxu1 %v1140_v0  ;;  %v872_v37 = vpack.c.bf16 %v380_v35, %v379_v34  ;;  %v381_v40 = vld [vmem:[#allocation5 + $0x60] sm:$0xff]  ;;  %v382_v41 = vld [vmem:[#allocation5 + $0x68] sm:$0xff]  ;;  %v851_v42 = vpack.c.bf16 %v295_v39, %v294_v38  ;;  %v296_v44 = vld [vmem:[#allocation2 + $0x70] sm:$0xff]  ;;  %s1143_s22 = smov [#allocation8]  }
  0x6e   : > { %v875_v43 = vpack.c.bf16 %v382_v41, %v381_v40  ;;  %v297_v45 = vld [vmem:[#allocation2 + $0x78] sm:$0xff]  ;;  %v383_v46 = vld [vmem:[#allocation5 + $0x70] sm:$0xff]  ;;  %v456_v50 = vld [vmem:[#allocation7] sm:$0xff]  ;;  %p1065_p8 = pnand %p1064_p4, %p1436_p7  ;;  %s1067_s8 = sshll.u32 %s1143_s22, 4  ;;  %s1068_s8 = int_to_ptr.vmem [resolvable:$false] %s1067_s8 }
  0x6f   : > { %840 = vmatpush3.bf16.msra.mxu0 %v839_v18  ;;  %v384_v47 = vld [vmem:[#allocation5 + $0x78] sm:$0xff]  ;;  %v854_v48 = vpack.c.bf16 %v297_v45, %v296_v44  ;;  %v457_v51 = vld [vmem:[#allocation7 + $0x8] sm:$0xff]  ;;  %v281_v52 = vld [vmem:[%s276_s9] sm:$0xff]  ;;  %s1069_s12 = scalar_lea.vmem %s1068_s8, 256  ;;  %p1070_p13 = scmp.lt.s32.totalorder %s1371_s25, %s1068_s8 }
  0x70   : > { %864 = vmatpush3.bf16.msra.mxu1 %v863_v19  ;;  %841 = vmatprep.subr.bf16.mxu0 %v1140_v0  ;;  %v878_v49 = vpack.c.bf16 %v384_v47, %v383_v46  ;;  %v881_v53 = vpack.c.bf16 %v457_v51, %v456_v50  ;;  %v368_v54 = vld [vmem:[%s280_s14] sm:$0xff]  ;;  %v458_v55 = vld [vmem:[#allocation7 + $0x10] sm:$0xff]  ;;  %v459_v56 = vld [vmem:[#allocation7 + $0x18] sm:$0xff]  ;;  %p1066_p11 = pneg %p1065_p8  ;;  %p1071_p1 = scmp.lt.s32.totalorder %s1069_s12, %s1063_s30 }
  0x71   : > { %865 = vmatprep.subr.bf16.mxu1 %v1140_v0  ;;  %v884_v57 = vpack.c.bf16 %v459_v56, %v458_v55  ;;  %v460_v58 = vld [vmem:[#allocation7 + $0x20] sm:$0xff]  ;;  %v461_v59 = vld [vmem:[#allocation7 + $0x28] sm:$0xff]  ;;  %v462_v61 = vld [vmem:[#allocation7 + $0x30] sm:$0xff] }
  0x72   : > { %v887_v60 = vpack.c.bf16 %v461_v59, %v460_v58  ;;  %v463_v62 = vld [vmem:[#allocation7 + $0x38] sm:$0xff]  ;;  %v464_v2 = vld [vmem:[#allocation7 + $0x40] sm:$0xff]  ;;  %v465_v3 = vld [vmem:[#allocation7 + $0x48] sm:$0xff]  ;;  %p1072_p6 = por %p1071_p1, %p1070_p13 }
  0x73   : > { %843 = vmatpush3.bf16.msra.mxu0 %v842_v24  ;;  %v890_v63 = vpack.c.bf16 %v463_v62, %v462_v61  ;;  %v893_v4 = vpack.c.bf16 %v465_v3, %v464_v2  ;;  %v466_v5 = vld [vmem:[#allocation7 + $0x50] sm:$0xff]  ;;  %v467_v6 = vld [vmem:[#allocation7 + $0x58] sm:$0xff]  ;;  %v468_v7 = vld [vmem:[#allocation7 + $0x60] sm:$0xff] }
  0x74   : > { %867 = vmatpush3.bf16.msra.mxu1 %v866_v25  ;;  %844 = vmatprep.subr.bf16.mxu0 %v1140_v0  ;;  %v469_v8 = vld [vmem:[#allocation7 + $0x68] sm:$0xff]  ;;  %v470_v10 = vld [vmem:[#allocation7 + $0x70] sm:$0xff]  ;;  %v471_v11 = vld [vmem:[#allocation7 + $0x78] sm:$0xff]  ;;  %p1073_p9 = pnand %p1072_p6, %p1066_p11 }
  0x75   : > { %868 = vmatprep.subr.bf16.mxu1 %v1140_v0  ;;  %v899_v9 = vpack.c.bf16 %v469_v8, %v468_v7  ;;  %v902_v12 = vpack.c.bf16 %v471_v11, %v470_v10 }
  0x77   : > { %846 = vmatpush3.bf16.msra.mxu0 %v845_v30 }
  0x78   : > { %870 = vmatpush3.bf16.msra.mxu1 %v869_v31  ;;  %847 = vmatprep.subr.bf16.mxu0 %v1140_v0 }
  0x79   : > { %871 = vmatprep.subr.bf16.mxu1 %v1140_v0 }
  0x7b   : > { %849 = vmatpush3.bf16.msra.mxu0 %v848_v36 }
  0x7c   : > { %873 = vmatpush3.bf16.msra.mxu1 %v872_v37  ;;  %850 = vmatprep.subr.bf16.mxu0 %v1140_v0 }
  0x7d   : > { %874 = vmatprep.subr.bf16.mxu1 %v1140_v0 }
  0x7f   : > { %852 = vmatpush3.bf16.msra.mxu0 %v851_v42 }
  0x80   : > { %876 = vmatpush3.bf16.msra.mxu1 %v875_v43  ;;  %853 = vmatprep.subr.bf16.mxu0 %v1140_v0 }
  0x81   : > { %877 = vmatprep.subr.bf16.mxu1 %v1140_v0 }
  0x83   : > { %855 = vmatpush3.bf16.msra.mxu0 %v854_v48 }
  0x84   : > { %879 = vmatpush3.bf16.msra.mxu1 %v878_v49  ;;  %880 = vmatprep.subr.bf16.mxu0 %v1140_v0 }
  0x86   : > { %760 = vmatmul.mubr.f32.vlgmr.msra.gmra.mrb[0].mxu0 %v281_v52 }
  0x87   : > { %795 = vmatmul.mubr.f32.vlgmr.msra.gmra.mrb[0].mxu1 %v368_v54  ;;  %882 = vmatpush3.bf16.msra.mxu0 %v881_v53 }
  0x88   : > { %883 = vmatprep.subr.bf16.mxu0 %v1140_v0  ;;  %829 = vmatprep.mubr.msk.f32.mxu0 %vm1141_vm0, %v1142_v1  ;;  %v896_v1 = vpack.c.bf16 %v467_v6, %v466_v5 }
  0x8b   : > { %885 = vmatpush3.bf16.msra.mxu0 %v884_v57 }
  0x8c   : > { %886 = vmatprep.subr.bf16.mxu0 %v1140_v0 }
  0x8f   : > { %888 = vmatpush3.bf16.msra.mxu0 %v887_v60 }
  0x90   : > { %889 = vmatprep.subr.bf16.mxu0 %v1140_v0 }
  0x93   : > { %891 = vmatpush3.bf16.msra.mxu0 %v890_v63 }
  0x94   : > { %892 = vmatprep.subr.bf16.mxu0 %v1140_v0 }
  0x97   : > { %894 = vmatpush3.bf16.msra.mxu0 %v893_v4 }
  0x98   : > { %895 = vmatprep.subr.bf16.mxu0 %v1140_v0 }
  0x9b   : > { %897 = vmatpush3.bf16.msra.mxu0 %v896_v1 }
  0x9c   : > { %898 = vmatprep.subr.bf16.mxu0 %v1140_v0 }
  0x9f   : > { %900 = vmatpush3.bf16.msra.mxu0 %v899_v9 }
  0xa0   : > { %901 = vmatprep.subr.bf16.mxu0 %v1140_v0 }
  0xa3   : > { %903 = vmatpush3.bf16.msra.mxu0 %v902_v12 }
 0x159   : > { %v364_v13 = vpop.f32.mrb[0].mxu0 }
 0x15a   : > { %v451_v14 = vpop.f32.mrb[0].mxu1  ;;  %v761_v15 = vpop.f32.mrb[1].mxu0 }
 0x15b   : > { %v455_v16 = vmul.f32 %v451_v14, %v364_v13  ;;  %v796_v17 = vpop.f32.mrb[1].mxu1 }
 0x15d   : > { %830 = vmatmul.mubr.f32.vlgmr.msra.gmra.mrb[2].mxu0 %v455_v16 }
 0x230   : > { %v538_v0 = vpop.f32.mrb[2].mxu0 }
 0x231   : > { %542 = vst [vmem:[%s272_s17] sm:$0xff] %v538_v0  ;;  %v831_v18 = vpop.f32.mrb[3].mxu0 }
 0x232   : > { %1076 = shalt.err (!%p1073_p9)
}
 0x233   : > { %s1077_s23 = scalar_lea.hbm %s1376_s10, 128  ;;  %s1081_s13 = scalar_lea.hbm %s1421_s5, 256 }
 0x234   : > { %p1078_p2 = scmp.ne.s32.totalorder %s1376_s10, %s1077_s23  ;;  %p1082_p5 = scmp.lt.u32.totalorder %s1376_s10, %s1421_s5 }
 0x235   : > { %p1083_p10 = scmp.lt.u32.totalorder %s1081_s13, %s1077_s23  ;;  %p1085_p4 = scmp.lt.u32.totalorder %s1077_s23, %s1376_s10 }
 0x236   : > { %p1079_p0 = pnand %p1078_p2, %p1436_p7 }
 0x237   : > { %p1084_p12 = por %p1083_p10, %p1082_p5 }
 0x238   : > { %p1080_p3 = pneg %p1079_p0 }
 0x239   : > { %p1086_p8 = por %p1085_p4, %p1084_p12 }
 0x23b   : > { %p1087_p11 = pnand %p1086_p8, %p1080_p3 }
 0x23d   : > { %1090 = shalt.err (!%p1087_p11)
}
 0x23e   : > { %916 = dma.vmem_to_hbm [thread:$0]  (%p1436_p7), %s1371_s25, 128, %s1376_s10, %s544_s27  }
 0x23f PF: > { %p938_p13 = scmp.ge.s32.totalorder %s1133_s21, 2  ;;  %s569_s16 = sand.u32 1, %s1121_s18  }
 0x240   : > { %p1437_p1 = scmp.ne.s32.totalorder %s1427_s29, 0  ;;  %s570_s17 = scalar_lea.sflag [#allocation4], %s569_s16 }
 0x242   : > { %p929_p6 = pnand %p938_p13, %p1437_p1 }
 0x244   : > { %1116 = dma.done.wait (!%p929_p6), %s570_s17, 128  }
 0x245   : > { %1118 = vsyncadd (!%p929_p6), %s570_s17, 4294967168  ;;  %s1438_s26 = sld [smem:[#allocation12_spill]]  ;;  %p17_p9 = scmp.ge.s32.totalorder %s1199_s24, 4  }
 0x246   : > { %s1439_s18 = smov %s1125_s19  ;;  %s1440_s19 = smov %s1129_s20 }
 0x247   : > { %s1442_s21 = smov %s1199_s24  ;;  %19 = sbr.rel (!%p17_p9) target bundleno = 5 (0x5), region = 91 }
 0x24b   : > { %s1441_s20 = smov %s1438_s26 }
 0x24e   :  { %575 = vsyncpa [#allocation3], 1 }
 0x24f   :  { %577 = vsyncpa [#allocation3 + $0x1], 1 }
 0x250   :  { %578 = vsyncpa [#allocation6], 1 }
 0x251   :  { %579 = vsyncpa [#allocation4], 1 }
 0x252   :  { %581 = vsyncpa [#allocation4 + $0x1], 1 }

</bundles_post_ra>
